<compile_context>
chip_gen: v7x
topology: tpu7x:2x2x1
jax: 0.10.0
libtpu: 0.0.40
codegen_flags: <defaults>
</compile_context>

<pallas_src>
import jax
import jax.numpy as jnp
from jax.experimental import pallas as pl
from jax.experimental.pallas import tpu as pltpu

IN_F = 28 * 28       # 784
H1 = 128
H2 = 64
OUT_F = 10
OUT_F_PAD = 128      # lane-dense output block
NEG_BIG = -1e30      # mask value for padded class columns


def mlp_kernel(x_ref, w1_ref, b1_ref, w2_ref, b2_ref, w3_ref, b3_ref, o_ref):
    # x arrives as f32 straight from HBM; cast to bf16 for the MXU here.
    x = x_ref[...].astype(jnp.bfloat16)
    # layer 1: bf16 @ bf16 -> f32 accum, + bias, relu
    h1 = jnp.dot(x, w1_ref[...], preferred_element_type=jnp.float32)
    h1 = jnp.maximum(h1 + b1_ref[...], 0.0).astype(jnp.bfloat16)
    # layer 2
    h2 = jnp.dot(h1, w2_ref[...], preferred_element_type=jnp.float32)
    h2 = jnp.maximum(h2 + b2_ref[...], 0.0).astype(jnp.bfloat16)
    # layer 3 (output padded to 128 lanes; cols >= 10 are not real classes)
    logits = jnp.dot(h2, w3_ref[...], preferred_element_type=jnp.float32) + b3_ref[...]
    col = jax.lax.broadcasted_iota(jnp.int32, logits.shape, dimension=1)
    logits = jnp.where(col < OUT_F, logits, NEG_BIG)
    # numerically stable log_softmax over the class axis (per-row)
    m = jnp.max(logits, axis=1, keepdims=True)
    shifted = logits - m
    lse = jnp.log(jnp.sum(jnp.exp(shifted), axis=1, keepdims=True))
    o_ref[...] = (shifted - lse).astype(o_ref.dtype)


def _round_up(n, m):
    return ((n + m - 1) // m) * m


def _choose_tile_b(batch, tile_b_max):
    """Pick the batch tile: minimal padding for small B, >=2 tiles for big B."""
    if batch <= 256:
        # Single tile, minimal (sublane-aligned) padding; nothing to shard.
        return max(8, _round_up(batch, 8))
    # At least two tiles so v7x's 2 TensorCores both get work, while keeping
    # per-tile padding small and each tile <= tile_b_max.
    n_tiles = max(2, pl.cdiv(_round_up(batch, 128), tile_b_max))
    return min(tile_b_max, _round_up(pl.cdiv(batch, n_tiles), 128))


def modelo_forward(x, params, tile_b_max=1024):
    """x: [B, 784] float32. Returns log-probs [B, 10] float32."""
    w1, b1, w2, b2, w3, b3 = params
    B = x.shape[0]

    tile_b = _choose_ile_b(B, tile_b_max) if False else _choose_tile_b(B, tile_b_max)
    grid_b = pl.cdiv(B, tile_b)

    # Small one-time host-side prep of the (tiny) weights only; x is untouched.
    w1_c = w1.astype(jnp.bfloat16)                                    # (784, 128)
    w2_c = w2.astype(jnp.bfloat16)                                    # (128, 64)
    w3_p = jnp.zeros((H2, OUT_F_PAD), jnp.bfloat16).at[:, :OUT_F].set(
        w3.astype(jnp.bfloat16))                                      # (64, 128)
    b1_c = b1.astype(jnp.float32)                                     # (1, 128)
    b2_c = b2.astype(jnp.float32)                                     # (1, 64)
    b3_p = jnp.zeros((1, OUT_F_PAD), jnp.float32).at[:, :OUT_F].set(
        b3.astype(jnp.float32))                                       # (1, 128)

    # Constant index_map -> weight/bias blocks DMA'd once and kept resident.
    def resident(shape):
        zeros = (0,) * len(shape)
        return pl.BlockSpec(shape, lambda i, _z=zeros: _z)

    flops = 2 * B * (IN_F * H1 + H1 * H2 + H2 * OUT_F)
    bytes_accessed = (
        x.size * 4                                              # f32 x stream
        + (w1_c.size + w2_c.size + w3_p.size) * 2               # bf16 weights (once)
        + (b1_c.size + b2_c.size + b3_p.size) * 4               # f32 biases (once)
        + B * OUT_F_PAD * 4                                     # f32 output slab
    )

    out = pl.pallas_call(
        mlp_kernel,
        out_shape=jax.ShapeDtypeStruct((B, OUT_F_PAD), jnp.float32),
        grid=(grid_b,),
        in_specs=[
            pl.BlockSpec((tile_b, IN_F), lambda i: (i, 0)),     # x, streamed f32
            resident(w1_c.shape), resident(b1_c.shape),
            resident(w2_c.shape), resident(b2_c.shape),
            resident(w3_p.shape), resident(b3_p.shape),
        ],
        out_specs=pl.BlockSpec((tile_b, OUT_F_PAD), lambda i: (i, 0)),
        compiler_params=pltpu.CompilerParams(
            dimension_semantics=("parallel",),
            vmem_limit_bytes=32 * 1024 * 1024,
        ),
        cost_estimate=pl.CostEstimate(
            flops=flops,
            transcendentals=B * (OUT_F_PAD + 1),
            bytes_accessed=bytes_accessed,
        ),
    )(x, w1_c, b1_c, w2_c, b2_c, w3_p, b3_p)
    # Real classes only; under jit this slice fuses with the consumer.
    return out[:, :OUT_F]


def init_params(key):
    # Mirrors nn.Linear shapes, but weights stored transposed ([in, out]) so the
    # kernel computes y = x @ W + b directly on the MXU.
    ks = jax.random.split(key, 6)

    def lin(kw, kb, fan_in, fan_out):
        bound = 1.0 / jnp.sqrt(fan_in)
        w = jax.random.uniform(kw, (fan_in, fan_out), jnp.float32, -bound, bound)
        b = jax.random.uniform(kb, (1, fan_out), jnp.float32, -bound, bound)
        return w, b

    w1, b1 = lin(ks[0], ks[1], IN_F, H1)
    w2, b2 = lin(ks[2], ks[3], H1, H2)
    w3, b3 = lin(ks[4], ks[5], H2, OUT_F)
    return (w1, b1, w2, b2, w3, b3)


def reference_forward(x, params):
    w1, b1, w2, b2, w3, b3 = params
    h1 = jnp.maximum(x @ w1 + b1, 0.0)
    h2 = jnp.maximum(h1 @ w2 + b2, 0.0)
    logits = h2 @ w3 + b3
    return jax.nn.log_softmax(logits, axis=1)


if __name__ == "__main__":
    key = jax.random.PRNGKey(0)
    kx, kp = jax.random.split(key)
    B = 8
    x = jax.random.normal(kx, (B, IN_F), jnp.float32)
    params = init_params(kp)

    out = modelo_forward(x, params)
    out = jax.block_until_ready(out)

    ref = reference_forward(x, params)  # pure-f32 reference
    assert out.shape == (B, OUT_F)
    assert jnp.all(jnp.isfinite(out))
    # bf16 MXU inputs / f32 accumulation -> looser tolerance than pure-f32 path.
    assert jnp.allclose(out, ref, atol=5e-2, rtol=5e-2), (
        f"max abs diff {float(jnp.max(jnp.abs(out - ref)))}")
    print("KERNEL_OK")
</pallas_src>

<mosaic_0001>
module attributes {stable_mosaic.version = 11 : i64} {
  func.func @mlp_kernel(%arg0: i32, %arg1: memref<8x784xf32, #tpu.memory_space<vmem>>, %arg2: memref<784x128xbf16, #tpu.memory_space<vmem>>, %arg3: memref<1x128xf32, #tpu.memory_space<vmem>>, %arg4: memref<128x64xbf16, #tpu.memory_space<vmem>>, %arg5: memref<1x64xf32, #tpu.memory_space<vmem>>, %arg6: memref<64x128xbf16, #tpu.memory_space<vmem>>, %arg7: memref<1x128xf32, #tpu.memory_space<vmem>>, %arg8: memref<8x128xf32, #tpu.memory_space<vmem>>) attributes {dimension_semantics = [#tpu.dimension_semantics<parallel>], iteration_bounds = array<i64: 1>, scalar_prefetch = 0 : i64, scratch_operands = 0 : i64, tpu.core_type = #tpu.core_type<tc>, window_params = [{transform_indices = @transform_0, window_bounds = array<i64: 8, 784>}, {pipeline_mode = #tpu.pipeline_mode<synchronous>, transform_indices = @transform_1, window_bounds = array<i64: 784, 128>}, {pipeline_mode = #tpu.pipeline_mode<synchronous>, transform_indices = @transform_2, window_bounds = array<i64: 1, 128>}, {pipeline_mode = #tpu.pipeline_mode<synchronous>, transform_indices = @transform_3, window_bounds = array<i64: 128, 64>}, {pipeline_mode = #tpu.pipeline_mode<synchronous>, transform_indices = @transform_4, window_bounds = array<i64: 1, 64>}, {pipeline_mode = #tpu.pipeline_mode<synchronous>, transform_indices = @transform_5, window_bounds = array<i64: 64, 128>}, {pipeline_mode = #tpu.pipeline_mode<synchronous>, transform_indices = @transform_6, window_bounds = array<i64: 1, 128>}, {transform_indices = @transform_7, window_bounds = array<i64: 8, 128>}]} {
    %c0 = arith.constant 0 : index
    %c0_0 = arith.constant 0 : index
    %0 = vector.load %arg1[%c0, %c0_0] : memref<8x784xf32, #tpu.memory_space<vmem>>, vector<8x784xf32>
    %1 = arith.truncf %0 : vector<8x784xf32> to vector<8x784xbf16>
    %c0_1 = arith.constant 0 : index
    %c0_2 = arith.constant 0 : index
    %2 = vector.load %arg2[%c0_1, %c0_2] : memref<784x128xbf16, #tpu.memory_space<vmem>>, vector<784x128xbf16>
    %cst = arith.constant dense<0.000000e+00> : vector<8x128xf32>
    %3 = tpu.matmul %1, %2, %cst {dimension_numbers = #tpu.dot_dimension_numbers<[1], [0], [0], [1], [0, 0, 1, 1], [], []>} : vector<8x784xbf16>, vector<784x128xbf16>, vector<8x128xf32> -> vector<8x128xf32>
    %c0_3 = arith.constant 0 : index
    %c0_4 = arith.constant 0 : index
    %4 = vector.load %arg3[%c0_3, %c0_4] : memref<1x128xf32, #tpu.memory_space<vmem>>, vector<1x128xf32>
    %5 = vector.broadcast %4 : vector<1x128xf32> to vector<8x128xf32>
    %6 = arith.addf %3, %5 : vector<8x128xf32>
    %cst_5 = arith.constant 0.000000e+00 : f32
    %7 = vector.broadcast %cst_5 : f32 to vector<8x128xf32>
    %8 = arith.maximumf %6, %7 : vector<8x128xf32>
    %9 = arith.truncf %8 : vector<8x128xf32> to vector<8x128xbf16>
    %c0_6 = arith.constant 0 : index
    %c0_7 = arith.constant 0 : index
    %10 = vector.load %arg4[%c0_6, %c0_7] : memref<128x64xbf16, #tpu.memory_space<vmem>>, vector<128x64xbf16>
    %cst_8 = arith.constant dense<0.000000e+00> : vector<8x64xf32>
    %11 = tpu.matmul %9, %10, %cst_8 {dimension_numbers = #tpu.dot_dimension_numbers<[1], [0], [0], [1], [0, 0, 1, 1], [], []>} : vector<8x128xbf16>, vector<128x64xbf16>, vector<8x64xf32> -> vector<8x64xf32>
    %c0_9 = arith.constant 0 : index
    %c0_10 = arith.constant 0 : index
    %12 = vector.load %arg5[%c0_9, %c0_10] : memref<1x64xf32, #tpu.memory_space<vmem>>, vector<1x64xf32>
    %13 = vector.broadcast %12 : vector<1x64xf32> to vector<8x64xf32>
    %14 = arith.addf %11, %13 : vector<8x64xf32>
    %cst_11 = arith.constant 0.000000e+00 : f32
    %15 = vector.broadcast %cst_11 : f32 to vector<8x64xf32>
    %16 = arith.maximumf %14, %15 : vector<8x64xf32>
    %17 = arith.truncf %16 : vector<8x64xf32> to vector<8x64xbf16>
    %c0_12 = arith.constant 0 : index
    %c0_13 = arith.constant 0 : index
    %18 = vector.load %arg6[%c0_12, %c0_13] : memref<64x128xbf16, #tpu.memory_space<vmem>>, vector<64x128xbf16>
    %cst_14 = arith.constant dense<0.000000e+00> : vector<8x128xf32>
    %19 = tpu.matmul %17, %18, %cst_14 {dimension_numbers = #tpu.dot_dimension_numbers<[1], [0], [0], [1], [0, 0, 1, 1], [], []>} : vector<8x64xbf16>, vector<64x128xbf16>, vector<8x128xf32> -> vector<8x128xf32>
    %c0_15 = arith.constant 0 : index
    %c0_16 = arith.constant 0 : index
    %20 = vector.load %arg7[%c0_15, %c0_16] : memref<1x128xf32, #tpu.memory_space<vmem>>, vector<1x128xf32>
    %21 = vector.broadcast %20 : vector<1x128xf32> to vector<8x128xf32>
    %22 = arith.addf %19, %21 : vector<8x128xf32>
    %23 = tpu.iota {dimensions = array<i32: 1>} : vector<8x128xi32>
    %c10_i32 = arith.constant 10 : i32
    %24 = vector.broadcast %c10_i32 : i32 to vector<8x128xi32>
    %25 = arith.cmpi slt, %23, %24 : vector<8x128xi32>
    %cst_17 = arith.constant -1.000000e+30 : f32
    %26 = vector.broadcast %cst_17 : f32 to vector<8x128xf32>
    %27 = arith.select %25, %22, %26 : vector<8x128xi1>, vector<8x128xf32>
    %cst_18 = arith.constant dense<0xFF800000> : vector<8xf32>
    %28 = vector.multi_reduction <maximumf>, %27, %cst_18 [1] : vector<8x128xf32> to vector<8xf32>
    %29 = vector.shape_cast %28 : vector<8xf32> to vector<8x1xf32>
    %30 = vector.broadcast %29 : vector<8x1xf32> to vector<8x128xf32>
    %31 = arith.subf %27, %30 : vector<8x128xf32>
    %32 = math.exp %31 : vector<8x128xf32>
    %cst_19 = arith.constant dense<0.000000e+00> : vector<8xf32>
    %33 = vector.multi_reduction <add>, %32, %cst_19 [1] : vector<8x128xf32> to vector<8xf32>
    %34 = vector.shape_cast %33 : vector<8xf32> to vector<8x1xf32>
    %35 = math.log %34 : vector<8x1xf32>
    %36 = vector.broadcast %35 : vector<8x1xf32> to vector<8x128xf32>
    %37 = arith.subf %31, %36 : vector<8x128xf32>
    %c0_20 = arith.constant 0 : index
    %c0_21 = arith.constant 0 : index
    %38 = vector.load %arg8[%c0_20, %c0_21] : memref<8x128xf32, #tpu.memory_space<vmem>>, vector<8x128xf32>
    tpu.vector_store %arg8[%c0_20, %c0_21], %37 {strides = array<i32>} : memref<8x128xf32, #tpu.memory_space<vmem>>, vector<8x128xf32>,
    return
  }
  func.func @transform_0(%arg0: i32) -> (i32, i32) {
    %c0_i32 = arith.constant 0 : i32
    %c0_i32_0 = arith.constant 0 : i32
    return %arg0, %c0_i32 : i32, i32
  }
  func.func @transform_1(%arg0: i32) -> (i32, i32) {
    %c0_i32 = arith.constant 0 : i32
    %c0_i32_0 = arith.constant 0 : i32
    %c0_i32_1 = arith.constant 0 : i32
    return %c0_i32, %c0_i32_0 : i32, i32
  }
  func.func @transform_2(%arg0: i32) -> (i32, i32) {
    %c0_i32 = arith.constant 0 : i32
    %c0_i32_0 = arith.constant 0 : i32
    %c0_i32_1 = arith.constant 0 : i32
    return %c0_i32, %c0_i32_0 : i32, i32
  }
  func.func @transform_3(%arg0: i32) -> (i32, i32) {
    %c0_i32 = arith.constant 0 : i32
    %c0_i32_0 = arith.constant 0 : i32
    %c0_i32_1 = arith.constant 0 : i32
    return %c0_i32, %c0_i32_0 : i32, i32
  }
  func.func @transform_4(%arg0: i32) -> (i32, i32) {
    %c0_i32 = arith.constant 0 : i32
    %c0_i32_0 = arith.constant 0 : i32
    %c0_i32_1 = arith.constant 0 : i32
    return %c0_i32, %c0_i32_0 : i32, i32
  }
  func.func @transform_5(%arg0: i32) -> (i32, i32) {
    %c0_i32 = arith.constant 0 : i32
    %c0_i32_0 = arith.constant 0 : i32
    %c0_i32_1 = arith.constant 0 : i32
    return %c0_i32, %c0_i32_0 : i32, i32
  }
  func.func @transform_6(%arg0: i32) -> (i32, i32) {
    %c0_i32 = arith.constant 0 : i32
    %c0_i32_0 = arith.constant 0 : i32
    %c0_i32_1 = arith.constant 0 : i32
    return %c0_i32, %c0_i32_0 : i32, i32
  }
  func.func @transform_7(%arg0: i32) -> (i32, i32) {
    %c0_i32 = arith.constant 0 : i32
    %c0_i32_0 = arith.constant 0 : i32
    return %arg0, %c0_i32 : i32, i32
  }
}

</mosaic_0001>

<bundles_post_ra>
// kernel: tpu_custom_call.1
= control target key start
LH: loop header
LB: loop body
LE: loop exit
PB: predicated region body
PF: predicated region fallthrough
CT: control target
= control target key end

     0   :  { %12 = vsyncpa [#allocation3], 0  ;;  %s1307_s0 = inlined_call_operand.vmem [shape: f32[8,784], index: 0, kind: input, shape index: {}]   ;;  %s1308_s1 = inlined_call_operand.hbm [shape: bf16[784,128], index: 1, kind: input, shape index: {}]   ;;  %s1309_s2 = inlined_call_operand.vmem [shape: f32[1,128], index: 2, kind: input, shape index: {}]   ;;  %s1310_s3 = inlined_call_operand.vmem [shape: bf16[128,64], index: 3, kind: input, shape index: {}]   ;;  %s1311_s4 = inlined_call_operand.vmem [shape: f32[1,64], index: 4, kind: input, shape index: {}]   ;;  %s1312_s5 = inlined_call_operand.vmem [shape: bf16[64,128], index: 5, kind: input, shape index: {}]   ;;  %s1313_s6 = inlined_call_operand.vmem [shape: f32[1,128], index: 6, kind: input, shape index: {}]   ;;  %s1314_s7 = inlined_call_operand.hbm [shape: f32[8,128], index: 7, kind: output, shape index: {}]  }
   0x1   :  { %13 = vsyncpa [#allocation4], 0  ;;  %s1152_s24 = smov [#allocation2]   ;;  %s1104_s28 = scalar_lea.hbm %s1308_s1, 6272 }
   0x2   :  { %s21_s25 = sshll.u32 %s1152_s24, 4  ;;  %p1105_p0 = scmp.ne.s32.totalorder %s1308_s1, %s1104_s28  ;;  %s22_s25 = int_to_ptr.vmem [resolvable:$true] %s21_s25 }
   0x3   :  { %p1108_p1 = scmp.lt.u32.totalorder %s1104_s28, %s1308_s1 }
   0x5   :  { %p1110_p2 = pnand %p1108_p1, %p1105_p0 }
   0x7   :  { %1113 = shalt.err (!%p1110_p2)
}
   0x8   :  { %s1114_s10 = scalar_lea.vmem %s22_s25, 6272  ;;  %p1119_p4 = scmp.lt.s32.totalorder %s22_s25, %s22_s25 }
   0x9   :  { %p1115_p3 = scmp.ne.s32.totalorder %s22_s25, %s1114_s10  ;;  %p1120_p5 = scmp.lt.s32.totalorder %s1114_s10, %s1114_s10 }
   0xb   :  { %p1121_p6 = por %p1120_p5, %p1119_p4 }
   0xd   :  { %p1122_p7 = pnand %p1121_p6, %p1115_p3 }
   0xf   :  { %1125 = shalt.err (!%p1122_p7)
}
  0x10   :  { %s1153_s11 = smov 64   ;;  %s1154_s12 = smov 4  }
  0x11   :  { %27 = dma.hbm_to_vmem [thread:$0]  %s1308_s1, 6272, %s22_s25, [#allocation3], %s1153_s11, %s1153_s11, %s1154_s12  }
  0x12   :  { %1148 = dma.done.wait [#allocation3], 6272  }
  0x13   :  { %1149 = vsyncadd [#allocation3], 4294961024  ;;  %v1039_v0 = vld [vmem:[#allocation2 + $0x40] sm:$0xff]   ;;  %v1043_v4 = vld [vmem:[#allocation2 + $0x48] sm:$0xff]   ;;  %v1155_v44 = vmov 0.0   ;;  %vm1156_vm0 = vmmov 0  }
  0x14   :  { %v1040_v1 = vld [vmem:[#allocation2] sm:$0xff]   ;;  %913 = vmatprep.subr.bf16.mxu0 %v1039_v0  ;;  %v1044_v5 = vld [vmem:[#allocation2 + $0x8] sm:$0xff]   ;;  %v1047_v8 = vld [vmem:[#allocation2 + $0x50] sm:$0xff]   ;;  %vm455_vm1 = vcmask 130048   ;;  %vm773_vm2 = vcmask 523264  }
  0x15   :  { %v1041_v2 = vld [vmem:[#allocation2 + $0xc0] sm:$0xff]   ;;  %914 = vmatpush3.bf16.msra.mxu0 %v1040_v1  ;;  %v1045_v6 = vld [vmem:[#allocation2 + $0xc8] sm:$0xff]   ;;  %v1048_v9 = vld [vmem:[#allocation2 + $0x10] sm:$0xff]  }
  0x16   :  { %v1042_v3 = vld [vmem:[#allocation2 + $0x80] sm:$0xff]   ;;  %935 = vmatprep.subr.bf16.mxu1 %v1041_v2  ;;  %915 = vmatprep.subr.bf16.mxu0 %v1043_v4  ;;  %v1046_v7 = vld [vmem:[#allocation2 + $0x88] sm:$0xff]   ;;  %v1049_v10 = vld [vmem:[#allocation2 + $0xd0] sm:$0xff]  }
  0x17   :  { %936 = vmatpush3.bf16.msra.mxu1 %v1042_v3  ;;  %v1050_v11 = vld [vmem:[#allocation2 + $0x90] sm:$0xff]   ;;  %v1051_v12 = vld [vmem:[#allocation2 + $0x58] sm:$0xff]   ;;  %v1055_v16 = vld [vmem:[#allocation2 + $0x60] sm:$0xff]  }
  0x18   :  { %937 = vmatprep.subr.bf16.mxu1 %v1045_v6  ;;  %v1052_v13 = vld [vmem:[#allocation2 + $0x18] sm:$0xff]   ;;  %v1056_v17 = vld [vmem:[#allocation2 + $0x20] sm:$0xff]   ;;  %v1059_v20 = vld [vmem:[#allocation2 + $0x68] sm:$0xff]  }
  0x19   :  { %916 = vmatpush3.bf16.msra.mxu0 %v1044_v5  ;;  %v1053_v14 = vld [vmem:[#allocation2 + $0xd8] sm:$0xff]   ;;  %v1057_v18 = vld [vmem:[#allocation2 + $0xe0] sm:$0xff]   ;;  %v1060_v21 = vld [vmem:[#allocation2 + $0x28] sm:$0xff]  }
  0x1a   :  { %917 = vmatprep.subr.bf16.mxu0 %v1047_v8  ;;  %v1054_v15 = vld [vmem:[#allocation2 + $0x98] sm:$0xff]   ;;  %v1058_v19 = vld [vmem:[#allocation2 + $0xa0] sm:$0xff]   ;;  %v1061_v22 = vld [vmem:[#allocation2 + $0xe8] sm:$0xff]  }
  0x1b   :  { %938 = vmatpush3.bf16.msra.mxu1 %v1046_v7  ;;  %v1062_v23 = vld [vmem:[#allocation2 + $0xa8] sm:$0xff]   ;;  %v1063_v24 = vld [vmem:[#allocation2 + $0x70] sm:$0xff]   ;;  %v1067_v28 = vld [vmem:[#allocation2 + $0x78] sm:$0xff]  }
  0x1c   :  { %939 = vmatprep.subr.bf16.mxu1 %v1049_v10  ;;  %v1064_v25 = vld [vmem:[#allocation2 + $0x30] sm:$0xff]   ;;  %v1068_v29 = vld [vmem:[#allocation2 + $0x38] sm:$0xff]   ;;  %v43_v31 = vld [vmem:[%s1307_s0 + $0x8] sm:$0xff] }
  0x1d   :  { %918 = vmatpush3.bf16.msra.mxu0 %v1048_v9  ;;  %v1065_v26 = vld [vmem:[#allocation2 + $0xf0] sm:$0xff]   ;;  %v1069_v30 = vld [vmem:[#allocation2 + $0xf8] sm:$0xff]   ;;  %v50_v32 = vpack.c.bf16 %v43_v31, %v43_v31  ;;  %v42_v34 = vld [vmem:[%s1307_s0] sm:$0xff] }
  0x1e   :  { %919 = vmatprep.subr.bf16.mxu0 %v1051_v12  ;;  %v1066_v27 = vld [vmem:[#allocation2 + $0xb0] sm:$0xff]   ;;  %v1070_v33 = vld [vmem:[#allocation2 + $0xb8] sm:$0xff]   ;;  %v49_v35 = vpack.c.bf16 %v42_v34, %v42_v34  ;;  %v1071_v36 = vld [vmem:[#allocation2 + $0x140] sm:$0xff]  }
  0x1f   :  { %940 = vmatpush3.bf16.msra.mxu1 %v1050_v11  ;;  %v45_v37 = vld [vmem:[%s1307_s0 + $0x18] sm:$0xff]  ;;  %491 = vmatprep.mubr.bf16.mxu0 %v50_v32  ;;  %v1072_v39 = vld [vmem:[#allocation2 + $0x100] sm:$0xff]   ;;  %v44_v40 = vld [vmem:[%s1307_s0 + $0x10] sm:$0xff] }
  0x20   :  { %941 = vmatprep.subr.bf16.mxu1 %v1053_v14  ;;  %v52_v38 = vpack.c.bf16 %v45_v37, %v45_v37  ;;  %v51_v41 = vpack.c.bf16 %v44_v40, %v44_v40  ;;  %v1073_v42 = vld [vmem:[#allocation2 + $0x148] sm:$0xff]   ;;  %v1075_v45 = vld [vmem:[#allocation2 + $0x150] sm:$0xff]   ;;  %v1077_v47 = vld [vmem:[#allocation2 + $0x158] sm:$0xff]  }
  0x21   :  { %920 = vmatpush3.bf16.msra.mxu0 %v1052_v13  ;;  %v1074_v43 = vld [vmem:[#allocation2 + $0x108] sm:$0xff]   ;;  %v1076_v46 = vld [vmem:[#allocation2 + $0x110] sm:$0xff]   ;;  %v1078_v48 = vld [vmem:[#allocation2 + $0x118] sm:$0xff]  }
  0x22   :  { %921 = vmatprep.subr.bf16.mxu0 %v1055_v16  ;;  %531 = vmatprep.mubr.bf16.mxu1 %v52_v38  ;;  %v1079_v49 = vld [vmem:[#allocation2 + $0x160] sm:$0xff]   ;;  %v1081_v51 = vld [vmem:[#allocation2 + $0x168] sm:$0xff]   ;;  %v1083_v55 = vld [vmem:[#allocation2 + $0x170] sm:$0xff]  }
  0x23   :  { %942 = vmatpush3.bf16.msra.mxu1 %v1054_v15  ;;  %v1080_v50 = vld [vmem:[#allocation2 + $0x120] sm:$0xff]   ;;  %v1082_v52 = vld [vmem:[#allocation2 + $0x128] sm:$0xff]   ;;  %v48_v57 = vld [vmem:[%s1307_s0 + $0x30] sm:$0xff] }
  0x24   :  { %943 = vmatprep.subr.bf16.mxu1 %v1057_v18  ;;  %v1087_v53 = vld [vmem:[#allocation2 + $0x180] sm:$0xff]   ;;  %v47_v54 = vld [vmem:[%s1307_s0 + $0x28] sm:$0xff]  ;;  %v55_v58 = vpack.c.bf16 %v48_v57, %v48_v57  ;;  %v1084_v59 = vld [vmem:[#allocation2 + $0x130] sm:$0xff]  }
  0x25   :  { %922 = vmatpush3.bf16.msra.mxu0 %v1056_v17  ;;  %v54_v56 = vpack.c.bf16 %v47_v54, %v47_v54  ;;  %v1085_v60 = vld [vmem:[#allocation2 + $0x178] sm:$0xff]   ;;  %v46_v62 = vld [vmem:[%s1307_s0 + $0x20] sm:$0xff]  ;;  %v1089_v1 = vld [vmem:[%s1310_s3 + $0x8] sm:$0xff]  }
  0x26   :  { %923 = vmatprep.subr.bf16.mxu0 %v1059_v20  ;;  %v1086_v61 = vld [vmem:[#allocation2 + $0x138] sm:$0xff]   ;;  %v53_v63 = vpack.c.bf16 %v46_v62, %v46_v62  ;;  %v1088_v0 = vld [vmem:[%s1310_s3] sm:$0xff]   ;;  %v1090_v2 = vld [vmem:[%s1310_s3 + $0x10] sm:$0xff]  }
  0x27   :  { %944 = vmatpush3.bf16.msra.mxu1 %v1058_v19  ;;  %v1091_v3 = vld [vmem:[%s1310_s3 + $0x18] sm:$0xff]   ;;  %v1092_v4 = vld [vmem:[%s1310_s3 + $0x20] sm:$0xff]   ;;  %v1093_v5 = vld [vmem:[%s1310_s3 + $0x28] sm:$0xff]  }
  0x28   :  { %945 = vmatprep.subr.bf16.mxu1 %v1061_v22  ;;  %v1094_v6 = vld [vmem:[%s1310_s3 + $0x30] sm:$0xff]   ;;  %v1095_v7 = vld [vmem:[%s1310_s3 + $0x38] sm:$0xff]   ;;  %v1096_v8 = vld [vmem:[%s1312_s5] sm:$0xff]  }
  0x29   :  { %924 = vmatpush3.bf16.msra.mxu0 %v1060_v21  ;;  %v1097_v9 = vld [vmem:[%s1312_s5 + $0x8] sm:$0xff]   ;;  %v847_v11 = vld [vmem:[%s1309_s2] ss:$0 sm:$0xff]  ;;  %v1099_v37 = vld [vmem:[%s1312_s5 + $0x18] sm:$0xff]  }
  0x2a   :  { %925 = vmatprep.subr.bf16.mxu0 %v1063_v24  ;;  %v898_v38 = vld [vmem:[%s1311_s4] ss:$0 sm:$0xff]  ;;  %s1157_s4 = smov [#allocation5]  }
  0x2b   :  { %946 = vmatpush3.bf16.msra.mxu1 %v1062_v23 }
  0x2c   :  { %947 = vmatprep.subr.bf16.mxu1 %v1065_v26 }
  0x2d   :  { %926 = vmatpush3.bf16.msra.mxu0 %v1064_v25 }
  0x2e   :  { %927 = vmatprep.subr.bf16.mxu0 %v1067_v28 }
  0x2f   :  { %948 = vmatpush3.bf16.msra.mxu1 %v1066_v27 }
  0x30   :  { %949 = vmatprep.subr.bf16.mxu1 %v1069_v30 }
  0x31   :  { %928 = vmatpush3.bf16.msra.mxu0 %v1068_v29 }
  0x32   :  { %957 = vmatprep.subr.bf16.mxu0 %v1071_v36  ;;  %v1098_v36 = vld [vmem:[%s1312_s5 + $0x10] sm:$0xff]   ;;  %s838_s5 = sshll.u32 %s1157_s4, 4  ;;  %s839_s5 = int_to_ptr.vmem [resolvable:$true] %s838_s5 }
  0x33   :  { %950 = vmatpush3.bf16.msra.mxu1 %v1070_v33  ;;  %p1131_p9 = scmp.lt.s32.totalorder %s839_s5, %s839_s5 }
  0x34   :  { %492 = vmatmul.mubr.bf16.vlgmr.msra.gmra.mrb[0].mxu0 %v49_v35  ;;  %995 = vmatprep.subr.bf16.mxu1 %v1155_v44 }
  0x35   :  { %958 = vmatpush3.bf16.msra.mxu0 %v1072_v39  ;;  %571 = vmatprep.mubr.bf16.mxu0 %v54_v56 }
  0x36   :  { %532 = vmatmul.mubr.bf16.vlgmr.msra.gmra.mrb[0].mxu1 %v51_v41  ;;  %959 = vmatprep.subr.bf16.mxu0 %v1073_v42 }
  0x37   :  { %997 = vmatprep.mubr.msk.bf16.mxu1 %vm1156_vm0, %v1155_v44  ;;  %996 = vmatpush3.bf16.msra.mxu1 %v1087_v53 }
  0x38   :  { %1001 = vmatprep.subr.bf16.mxu1 %v1155_v44 }
  0x39   :  { %960 = vmatpush3.bf16.msra.mxu0 %v1074_v43 }
  0x3a   :  { %961 = vmatprep.subr.bf16.mxu0 %v1075_v45 }
  0x3d   :  { %962 = vmatpush3.bf16.msra.mxu0 %v1076_v46 }
  0x3e   :  { %963 = vmatprep.subr.bf16.mxu0 %v1077_v47  ;;  %998 = vmatmul.mubr.msk.bf16.vlgmr.msra.gmra.mrb[4].mxu1 %vm455_vm1, %v55_v58  ;;  %v817_v47 = vlaneseq }
  0x3f   :  { %1017 = vmatprep.mubr.msk.bf16.mxu1 %vm1156_vm0, %v1155_v44  ;;  %1002 = vmatpush3.bf16.msra.mxu1 %v1088_v0 }
  0x40   :  { %1003 = vmatprep.subr.bf16.mxu1 %v1155_v44 }
  0x41   :  { %964 = vmatpush3.bf16.msra.mxu0 %v1078_v48  ;;  %v907_v48 = vld [vmem:[%s1313_s6] ss:$0 sm:$0xff]  ;;  %s1126_s6 = scalar_lea.vmem %s839_s5, 128 }
  0x42   :  { %965 = vmatprep.subr.bf16.mxu0 %v1079_v49  ;;  %p1127_p8 = scmp.ne.s32.totalorder %s839_s5, %s1126_s6  ;;  %p1132_p10 = scmp.lt.s32.totalorder %s1126_s6, %s1126_s6 }
  0x43   :  { %1004 = vmatpush3.bf16.msra.mxu1 %v1089_v1 }
  0x44   :  { %1005 = vmatprep.subr.bf16.mxu1 %v1155_v44  ;;  %p1133_p11 = por %p1132_p10, %p1131_p9 }
  0x45   :  { %966 = vmatpush3.bf16.msra.mxu0 %v1080_v50 }
  0x46   :  { %967 = vmatprep.subr.bf16.mxu0 %v1081_v51  ;;  %p1134_p12 = pnand %p1133_p11, %p1127_p8 }
  0x47   :  { %1006 = vmatpush3.bf16.msra.mxu1 %v1090_v2 }
  0x48   :  { %1007 = vmatprep.subr.bf16.mxu1 %v1155_v44 }
  0x49   :  { %968 = vmatpush3.bf16.msra.mxu0 %v1082_v52 }
  0x4a   :  { %969 = vmatprep.subr.bf16.mxu0 %v1083_v55 }
  0x4b   :  { %1008 = vmatpush3.bf16.msra.mxu1 %v1091_v3 }
  0x4c   :  { %1009 = vmatprep.subr.bf16.mxu1 %v1155_v44 }
  0x4d   :  { %970 = vmatpush3.bf16.msra.mxu0 %v1084_v59 }
  0x4e   :  { %971 = vmatprep.subr.bf16.mxu0 %v1085_v60 }
  0x4f   :  { %1010 = vmatpush3.bf16.msra.mxu1 %v1092_v4 }
  0x50   :  { %1011 = vmatprep.subr.bf16.mxu1 %v1155_v44 }
  0x51   :  { %972 = vmatpush3.bf16.msra.mxu0 %v1086_v61 }
  0x52   :  { %1021 = vmatprep.subr.bf16.mxu0 %v1155_v44 }
  0x53   :  { %1012 = vmatpush3.bf16.msra.mxu1 %v1093_v5 }
  0x54   :  { %572 = vmatmul.mubr.bf16.vlgmr.msra.gmra.mrb[4].mxu0 %v53_v63  ;;  %1013 = vmatprep.subr.bf16.mxu1 %v1155_v44 }
  0x55   :  { %1029 = vmatprep.mubr.msk.bf16.mxu0 %vm1156_vm0, %v1155_v44  ;;  %1022 = vmatpush3.bf16.msra.mxu0 %v1096_v8 }
  0x56   :  { %1023 = vmatprep.subr.bf16.mxu0 %v1155_v44 }
  0x57   :  { %1014 = vmatpush3.bf16.msra.mxu1 %v1094_v6 }
  0x58   :  { %1015 = vmatprep.subr.bf16.mxu1 %v1155_v44 }
  0x59   :  { %1024 = vmatpush3.bf16.msra.mxu0 %v1097_v9 }
  0x5a   :  { %1025 = vmatprep.subr.bf16.mxu0 %v1155_v44 }
  0x5b   :  { %1016 = vmatpush3.bf16.msra.mxu1 %v1095_v7 }
  0x5d   :  { %1026 = vmatpush3.bf16.msra.mxu0 %v1098_v36 }
  0x5e   :  { %1027 = vmatprep.subr.bf16.mxu0 %v1155_v44  ;;  %v818_v44 = vand.u32 127, %v817_v47 }
  0x60   :  { %vm819_vm3 = vcmp.lt.s32.totalorder %v818_v44, 10 }
  0x61   :  { %1028 = vmatpush3.bf16.msra.mxu0 %v1099_v37 }
 0x107   :  { %v929_v10 = vpop.f32.mrb[0].mxu0 }
 0x108   :  { %v930_v12 = vpop.f32.mrb[1].mxu0 }
 0x109   :  { %v931_v13 = vadd.f32 %v930_v12, %v929_v10  ;;  %v932_v14 = vpop.f32.mrb[2].mxu0  ;;  %v951_v15 = vpop.f32.mrb[0].mxu1 }
 0x10a   :  { %v933_v16 = vpop.f32.mrb[3].mxu0  ;;  %v952_v18 = vpop.f32.mrb[1].mxu1 }
 0x10b   :  { %v494_v17 = vadd.f32 %v931_v13, %v847_v11  ;;  %v953_v19 = vadd.f32 %v952_v18, %v951_v15  ;;  %v954_v20 = vpop.f32.mrb[2].mxu1 }
 0x10c   :  { %v955_v21 = vpop.f32.mrb[3].mxu1 }
 0x10d   :  { %v534_v22 = vadd.f32 %v953_v19, %v494_v17 }
 0x111   :  { %v613_v23 = vpop.f32.mrb[4].mxu1 }
 0x112   :  { %v999_v24 = vpop.f32.mrb[5].mxu1 }
 0x113   :  { %v616_v25 = vpop.f32.mrb[6].mxu1 }
 0x114   :  { %v1000_v26 = vpop.f32.mrb[7].mxu1 }
 0x127   :  { %v973_v27 = vpop.f32.mrb[4].mxu0 }
 0x128   :  { %v974_v28 = vpop.f32.mrb[5].mxu0 }
 0x129   :  { %v975_v29 = vadd.f32 %v974_v28, %v973_v27  ;;  %v976_v30 = vpop.f32.mrb[6].mxu0 }
 0x12a   :  { %v977_v31 = vpop.f32.mrb[7].mxu0 }
 0x12b   :  { %v574_v32 = vadd.f32 %v975_v29, %v534_v22 }
 0x12d   :  { %v614_v33 = vadd.f32 %v613_v23, %v574_v32 }
 0x12f   :  { %v619_v34 = vmax.f32 %v614_v33, 0.0 }
 0x131   :  { %v620_v35 = vpack.c.bf16 %v619_v34, %v619_v34 }
 0x133   :  { %1018 = vmatmul.mubr.bf16.vlgmr.msra.gmra.mrb[8].mxu1 %v620_v35 }
 0x206   :  { %v726_v39 = vpop.f32.mrb[8].mxu1 }
 0x207   :  { %v727_v40 = vadd.f32 %v898_v38, %v726_v39  ;;  %v1019_v41 = vpop.f32.mrb[9].mxu1 }
 0x208   :  { %v729_v42 = vpop.f32.mrb[10].mxu1 }
 0x209   :  { %v732_v43 = vmax.f32 %v727_v40, 0.0  ;;  %v1020_v45 = vpop.f32.mrb[11].mxu1 }
 0x20b   :  { %v733_v46 = vpack.c.bf16 %v732_v43, %v732_v43 }
 0x20d   :  { %1030 = vmatmul.mubr.msk.bf16.vlgmr.msra.gmra.mrb[8].mxu0 %vm773_vm2, %v733_v46 }
 0x2e0   :  { %v811_v49 = vpop.f32.mrb[8].mxu0 }
 0x2e1   :  { %v812_v50 = vadd.f32 %v907_v48, %v811_v49  ;;  %v1031_v51 = vpop.f32.mrb[9].mxu0 }
 0x2e2   :  { %v814_v52 = vpop.f32.mrb[10].mxu0 }
 0x2e3   :  { %v1032_v53 = vpop.f32.mrb[11].mxu0  ;;  %v820_v54 = vsel %vm819_vm3, %v812_v50, -1e+30 }
 0x2e4   :  { %821 = vmax.xlane.f32.xlu0 %v820_v54 }
 0x371   :  { %v822_v55 = vpop.xlane.xlu0 %821 }
 0x372   :  { %v823_v56 = vsub.f32 %v820_v54, %v822_v55 }
 0x374   :  { %v824_v57 = vmul.f32 1.442695, %v823_v56 }
 0x376   :  { %1100 = vpow2.f32 %v824_v57 }
 0x380   :  { %v1101_v58 = vpop.eup %1100 }
 0x381   :  { %826 = vadd.xlane.f32.xlu0 %v1101_v58 }
 0x40e   :  { %v827_v59 = vpop.xlane.xlu0 %826 }
 0x40f   :  { %1102 = vlog2.f32 %v827_v59 }
 0x419   :  { %v1103_v60 = vpop.eup %1102 }
 0x41a   :  { %v829_v61 = vmul.f32 0.6931472, %v1103_v60 }
 0x41c   :  { %v830_v62 = vsub.f32 %v823_v56, %v829_v61 }
 0x41e   :  { %831 = vst [vmem:[#allocation5] sm:$0xff] %v830_v62 }
 0x41f   :  { %1137 = shalt.err (!%p1134_p12)
}
 0x420   :  { %s1138_s9 = scalar_lea.hbm %s1314_s7, 128 }
 0x421   :  { %p1139_p13 = scmp.ne.s32.totalorder %s1314_s7, %s1138_s9  ;;  %p1142_p0 = scmp.lt.u32.totalorder %s1138_s9, %s1314_s7 }
 0x423   :  { %p1144_p1 = pnand %p1142_p0, %p1139_p13 }
 0x425   :  { %1147 = shalt.err (!%p1144_p1)
}
 0x426   :  { %841 = dma.vmem_to_hbm [thread:$0]  %s839_s5, 128, %s1314_s7, [#allocation4]  }
 0x427   :  { %1150 = dma.done.wait [#allocation4], 128  }
 0x428   :  { %1151 = vsyncadd [#allocation4], 4294967168 }
 0x429   :  { %845 = vsyncpa [#allocation3], 1 }
 0x42a   :  { %846 = vsyncpa [#allocation4], 1 }

</bundles_post_ra>
